<compile_context>
chip_gen: v7x
topology: tpu7x:2x2x1
jax: 0.10.0
libtpu: 0.0.40
codegen_flags: <defaults>
</compile_context>

<pallas_src>
import jax
import jax.numpy as jnp
from jax.experimental import pallas as pl
from jax.experimental.pallas import tpu as pltpu

V = 50        # vocab size
E = 10        # embedding dim
H = 20        # sentence summary dim
S = 8         # tokens per sentence (small example)
L = 128       # TPU lane width

VP = 64       # padded vocab width (histogram lanes / encoder contraction rows)
HP = 24       # padded summary rows for the tail block

# --- packed slab layout (all padding rows/lanes MUST stay exactly zero) -----
R_ENC = 0                 # rows [0, 64)  : emb @ w_proj (50,20) zero-padded
R_TAIL = VP               # rows [64, 88) : [wquad*M | wq | wr] (20,22) zero-padded
R_BPROJ = R_TAIL + HP     # row 88        : b_proj (cols 0:H)
R_SEL = R_BPROJ + 1       # rows 89,90    : selectors (1.0 at col H / col H+1)
R_BIAS = R_SEL + 2        # row 91        : b_mlp broadcast across all 128 lanes
R_TOT = 96                # padded to a multiple of 8 sublanes


def model_kernel(ids_ref, slab_ref, out_ref):
    """Fused forward for one (context, response) pair per grid step.

    ids_ref  : (B, 2*S) int32 in SMEM (scalar prefetch) — ctx ids in cols 0:S,
               rsp ids in cols S:2S.
    slab_ref : (96, 128) f32 packed parameters (single VMEM DMA).
    out_ref  : (1, 1, 128) f32 — sigmoid score broadcast across all lanes.
    """
    b = pl.program_id(0)

    # Per-sentence mean histogram built on the VPU (no one-hot matmul).
    iota = jax.lax.broadcasted_iota(jnp.int32, (2, VP), 1)
    row = jax.lax.broadcasted_iota(jnp.int32, (2, VP), 0)
    hist = jnp.zeros((2, VP), jnp.float32)
    for t in range(S):                       # unrolled; VALU-slot filler
        ctx_id = ids_ref[b, t]
        rsp_id = ids_ref[b, S + t]
        tid = jnp.where(row == 0, ctx_id, rsp_id)       # (2, 64) int32
        hist = hist + (iota == tid).astype(jnp.float32)
    hist = hist * (1.0 / S)                  # row 0 = ctx mean weights, row 1 = rsp

    # Encoder: ONE MXU pass.  emb @ w_proj was folded at pack time, so this
    # directly produces the pre-tanh summaries (lanes >= H stay exactly 0).
    pre = jnp.dot(hist, slab_ref[R_ENC:R_ENC + VP, :],
                  preferred_element_type=jnp.float32)            # (2, 128)
    summ = jnp.tanh(pre + slab_ref[R_BPROJ:R_BPROJ + 1, :])      # (2, 128)

    # Fused tail: [q; r] @ [wquad*M | wq | wr] -> one MXU pass.
    t_mat = jnp.dot(summ[:, 0:HP], slab_ref[R_TAIL:R_TAIL + HP, :],
                    preferred_element_type=jnp.float32)          # (2, 128)

    # Single fused reduction for quad + wq.q + wr.r:
    #   mult row 0 = r (summ row 1) + selector@col H   -> quad + q.wq
    #   mult row 1 = selector@col H+1                  -> r.wr
    sel = slab_ref[R_SEL:R_SEL + 2, :]                           # (2, 128)
    mask0 = (jax.lax.broadcasted_iota(jnp.int32, (2, L), 0) == 0
             ).astype(jnp.float32)
    mult = sel + mask0 * summ[1:2, :]                            # (2, 128)

    red = jnp.sum(t_mat * mult, keepdims=True)                   # (1, 1)
    logit = red + slab_ref[R_BIAS:R_BIAS + 1, :]                 # (1, 128) lane-dense
    out_ref[...] = jax.nn.sigmoid(logit).reshape(1, 1, L)


def pack_params(params):
    """Pack all parameters into one lane-dense slab. Done ONCE, not per call.

    Correctness relies on every padded row/lane being exactly zero:
      * encoder block lanes >= H and rows >= V are zero (=> summ lanes >= H are 0)
      * tail block lanes >= H+2 and rows >= H are zero
    We build from jnp.zeros so this holds by construction — do not change.
    """
    hp = jax.lax.Precision.HIGHEST
    w_mlp = params["w_mlp"]                       # (41,) = [wq (20), wquad, wr (20)]
    wq = w_mlp[:H]
    wquad = w_mlp[H]
    wr = w_mlp[H + 1:]

    emb_proj = jnp.dot(params["emb"], params["w_proj"], precision=hp)   # (50, 20)

    slab = jnp.zeros((R_TOT, L), jnp.float32)
    slab = slab.at[R_ENC:R_ENC + V, 0:H].set(emb_proj)
    slab = slab.at[R_TAIL:R_TAIL + H, 0:H].set(params["M"] * wquad)     # fold wquad into M
    slab = slab.at[R_TAIL:R_TAIL + H, H].set(wq)
    slab = slab.at[R_TAIL:R_TAIL + H, H + 1].set(wr)
    slab = slab.at[R_BPROJ, 0:H].set(params["b_proj"])
    slab = slab.at[R_SEL, H].set(1.0)
    slab = slab.at[R_SEL + 1, H + 1].set(1.0)
    slab = slab.at[R_BIAS, :].set(params["b_mlp"])                      # all lanes
    return slab


@jax.jit
def model_forward(ids, slab):
    """Batched forward.  ids: (B, 2*S) int32 (ctx cols 0:S, rsp cols S:2S)."""
    B = ids.shape[0]
    out = pl.pallas_call(
        model_kernel,
        out_shape=jax.ShapeDtypeStruct((B, 1, L), jnp.float32),
        grid_spec=pltpu.PrefetchScalarGridSpec(
            num_scalar_prefetch=1,
            grid=(B,),
            in_specs=[pl.BlockSpec((R_TOT, L), lambda b, ids_ref: (0, 0))],
            out_specs=pl.BlockSpec((1, 1, L), lambda b, ids_ref: (b, 0, 0)),
        ),
        compiler_params=pltpu.CompilerParams(
            dimension_semantics=("parallel",)),
    )(ids, slab)
    return out[:, 0, 0]                      # (B,) scores


def model_forward_pair(context_ids, response_ids, slab):
    """Single-pair API matching torch Model.forward(context, response) -> (1,)."""
    ids = jnp.concatenate([context_ids, response_ids]).astype(jnp.int32)
    return model_forward(ids.reshape(1, 2 * S), slab)


# ---------------------------------------------------------------------------
# Parameter init (mirrors init_weights: biases = 0.1, weights xavier_uniform,
# embedding table comes from weight_matrix and is left as-is).
# ---------------------------------------------------------------------------
def xavier_uniform(key, shape):
    fan_in, fan_out = shape
    limit = (6.0 / (fan_in + fan_out)) ** 0.5
    return jax.random.uniform(key, shape, jnp.float32, -limit, limit)


def init_params(key):
    k_emb, k_proj, k_m, k_mlp = jax.random.split(key, 4)
    return {
        "emb": jax.random.normal(k_emb, (V, E), jnp.float32),          # weight_matrix
        "w_proj": xavier_uniform(k_proj, (E, H)),
        "b_proj": jnp.full((H,), 0.1, jnp.float32),
        "M": xavier_uniform(k_m, (H, H)),
        "w_mlp": xavier_uniform(k_mlp, (1, 2 * H + 1)).reshape(-1),    # Linear(41,1) weight
        "b_mlp": jnp.float32(0.1),
    }


def reference_forward(context_ids, response_ids, params):
    """Pure-JAX reference for correctness checking."""
    hp = jax.lax.Precision.HIGHEST

    def summarize(ids):
        e = params["emb"][ids]                                         # (S, E)
        pooled = jnp.mean(e, axis=0)                                   # (E,)
        return jnp.tanh(jnp.dot(pooled, params["w_proj"], precision=hp)
                        + params["b_proj"])                            # (H,)

    q = summarize(context_ids)
    r = summarize(response_ids)
    quad = jnp.dot(jnp.dot(q, params["M"], precision=hp), r, precision=hp)
    w = params["w_mlp"]
    logit = (jnp.dot(w[:H], q, precision=hp) + w[H] * quad
             + jnp.dot(w[H + 1:], r, precision=hp) + params["b_mlp"])
    return jax.nn.sigmoid(logit)


if __name__ == "__main__":
    key = jax.random.PRNGKey(0)
    k_params, k_ids = jax.random.split(key)

    params = init_params(k_params)
    slab = pack_params(params)               # hoisted out of the per-call path

    B = 8                                    # batch of (context, response) pairs
    ids = jax.random.randint(k_ids, (B, 2 * S), 0, V, dtype=jnp.int32)

    scores = model_forward(ids, slab)
    jax.block_until_ready(scores)
    assert scores.shape == (B,)

    # Per-pair correctness vs pure-JAX reference.
    for i in range(B):
        ref = reference_forward(ids[i, :S], ids[i, S:], params)
        assert jnp.allclose(scores[i], ref, atol=2e-3, rtol=2e-3), (i, scores[i], ref)

    # Single-pair API (matches torch Model.forward output shape (1,)).
    single = model_forward_pair(ids[0, :S], ids[0, S:], slab)
    jax.block_until_ready(single)
    assert single.shape == (1,)
    assert jnp.allclose(single[0], scores[0], atol=1e-6)

    print("KERNEL_OK")
</pallas_src>

<mosaic_0001>
module attributes {stable_mosaic.version = 11 : i64} {
  func.func @model_kernel(%arg0: i32, %arg1: memref<8x16xi32, #tpu.memory_space<smem>>, %arg2: memref<96x128xf32, #tpu.memory_space<vmem>>, %arg3: memref<1x1x128xf32, #tpu.memory_space<vmem>>) attributes {dimension_semantics = [#tpu.dimension_semantics<parallel>], iteration_bounds = array<i64: 8>, scalar_prefetch = 1 : i64, scratch_operands = 0 : i64, tpu.core_type = #tpu.core_type<tc>, window_params = [{pipeline_mode = #tpu.pipeline_mode<synchronous>, transform_indices = @transform_0, window_bounds = array<i64: 96, 128>}, {transform_indices = @transform_1, window_bounds = array<i64: 1, 1, 128>}]} {
    %0 = tpu.iota {dimensions = array<i32: 1>} : vector<2x64xi32>
    %1 = tpu.iota {dimensions = array<i32: 0>} : vector<2x64xi32>
    %cst = arith.constant 0.000000e+00 : f32
    %2 = vector.broadcast %cst : f32 to vector<2x64xf32>
    %3 = arith.index_cast %arg0 : i32 to index
    %c0 = arith.constant 0 : index
    %4 = memref.load %arg1[%3, %c0] : memref<8x16xi32, #tpu.memory_space<smem>>
    %5 = arith.index_cast %arg0 : i32 to index
    %c8 = arith.constant 8 : index
    %6 = memref.load %arg1[%5, %c8] : memref<8x16xi32, #tpu.memory_space<smem>>
    %c0_i32 = arith.constant 0 : i32
    %7 = vector.broadcast %c0_i32 : i32 to vector<2x64xi32>
    %8 = arith.cmpi eq, %1, %7 : vector<2x64xi32>
    %9 = vector.broadcast %4 : i32 to vector<2x64xi32>
    %10 = vector.broadcast %6 : i32 to vector<2x64xi32>
    %11 = arith.select %8, %9, %10 : vector<2x64xi1>, vector<2x64xi32>
    %12 = arith.cmpi eq, %0, %11 : vector<2x64xi32>
    %13 = arith.extui %12 : vector<2x64xi1> to vector<2x64xi32>
    %14 = arith.sitofp %13 : vector<2x64xi32> to vector<2x64xf32>
    %15 = arith.addf %2, %14 : vector<2x64xf32>
    %16 = arith.index_cast %arg0 : i32 to index
    %c1 = arith.constant 1 : index
    %17 = memref.load %arg1[%16, %c1] : memref<8x16xi32, #tpu.memory_space<smem>>
    %18 = arith.index_cast %arg0 : i32 to index
    %c9 = arith.constant 9 : index
    %19 = memref.load %arg1[%18, %c9] : memref<8x16xi32, #tpu.memory_space<smem>>
    %c0_i32_0 = arith.constant 0 : i32
    %20 = vector.broadcast %c0_i32_0 : i32 to vector<2x64xi32>
    %21 = arith.cmpi eq, %1, %20 : vector<2x64xi32>
    %22 = vector.broadcast %17 : i32 to vector<2x64xi32>
    %23 = vector.broadcast %19 : i32 to vector<2x64xi32>
    %24 = arith.select %21, %22, %23 : vector<2x64xi1>, vector<2x64xi32>
    %25 = arith.cmpi eq, %0, %24 : vector<2x64xi32>
    %26 = arith.extui %25 : vector<2x64xi1> to vector<2x64xi32>
    %27 = arith.sitofp %26 : vector<2x64xi32> to vector<2x64xf32>
    %28 = arith.addf %15, %27 : vector<2x64xf32>
    %29 = arith.index_cast %arg0 : i32 to index
    %c2 = arith.constant 2 : index
    %30 = memref.load %arg1[%29, %c2] : memref<8x16xi32, #tpu.memory_space<smem>>
    %31 = arith.index_cast %arg0 : i32 to index
    %c10 = arith.constant 10 : index
    %32 = memref.load %arg1[%31, %c10] : memref<8x16xi32, #tpu.memory_space<smem>>
    %c0_i32_1 = arith.constant 0 : i32
    %33 = vector.broadcast %c0_i32_1 : i32 to vector<2x64xi32>
    %34 = arith.cmpi eq, %1, %33 : vector<2x64xi32>
    %35 = vector.broadcast %30 : i32 to vector<2x64xi32>
    %36 = vector.broadcast %32 : i32 to vector<2x64xi32>
    %37 = arith.select %34, %35, %36 : vector<2x64xi1>, vector<2x64xi32>
    %38 = arith.cmpi eq, %0, %37 : vector<2x64xi32>
    %39 = arith.extui %38 : vector<2x64xi1> to vector<2x64xi32>
    %40 = arith.sitofp %39 : vector<2x64xi32> to vector<2x64xf32>
    %41 = arith.addf %28, %40 : vector<2x64xf32>
    %42 = arith.index_cast %arg0 : i32 to index
    %c3 = arith.constant 3 : index
    %43 = memref.load %arg1[%42, %c3] : memref<8x16xi32, #tpu.memory_space<smem>>
    %44 = arith.index_cast %arg0 : i32 to index
    %c11 = arith.constant 11 : index
    %45 = memref.load %arg1[%44, %c11] : memref<8x16xi32, #tpu.memory_space<smem>>
    %c0_i32_2 = arith.constant 0 : i32
    %46 = vector.broadcast %c0_i32_2 : i32 to vector<2x64xi32>
    %47 = arith.cmpi eq, %1, %46 : vector<2x64xi32>
    %48 = vector.broadcast %43 : i32 to vector<2x64xi32>
    %49 = vector.broadcast %45 : i32 to vector<2x64xi32>
    %50 = arith.select %47, %48, %49 : vector<2x64xi1>, vector<2x64xi32>
    %51 = arith.cmpi eq, %0, %50 : vector<2x64xi32>
    %52 = arith.extui %51 : vector<2x64xi1> to vector<2x64xi32>
    %53 = arith.sitofp %52 : vector<2x64xi32> to vector<2x64xf32>
    %54 = arith.addf %41, %53 : vector<2x64xf32>
    %55 = arith.index_cast %arg0 : i32 to index
    %c4 = arith.constant 4 : index
    %56 = memref.load %arg1[%55, %c4] : memref<8x16xi32, #tpu.memory_space<smem>>
    %57 = arith.index_cast %arg0 : i32 to index
    %c12 = arith.constant 12 : index
    %58 = memref.load %arg1[%57, %c12] : memref<8x16xi32, #tpu.memory_space<smem>>
    %c0_i32_3 = arith.constant 0 : i32
    %59 = vector.broadcast %c0_i32_3 : i32 to vector<2x64xi32>
    %60 = arith.cmpi eq, %1, %59 : vector<2x64xi32>
    %61 = vector.broadcast %56 : i32 to vector<2x64xi32>
    %62 = vector.broadcast %58 : i32 to vector<2x64xi32>
    %63 = arith.select %60, %61, %62 : vector<2x64xi1>, vector<2x64xi32>
    %64 = arith.cmpi eq, %0, %63 : vector<2x64xi32>
    %65 = arith.extui %64 : vector<2x64xi1> to vector<2x64xi32>
    %66 = arith.sitofp %65 : vector<2x64xi32> to vector<2x64xf32>
    %67 = arith.addf %54, %66 : vector<2x64xf32>
    %68 = arith.index_cast %arg0 : i32 to index
    %c5 = arith.constant 5 : index
    %69 = memref.load %arg1[%68, %c5] : memref<8x16xi32, #tpu.memory_space<smem>>
    %70 = arith.index_cast %arg0 : i32 to index
    %c13 = arith.constant 13 : index
    %71 = memref.load %arg1[%70, %c13] : memref<8x16xi32, #tpu.memory_space<smem>>
    %c0_i32_4 = arith.constant 0 : i32
    %72 = vector.broadcast %c0_i32_4 : i32 to vector<2x64xi32>
    %73 = arith.cmpi eq, %1, %72 : vector<2x64xi32>
    %74 = vector.broadcast %69 : i32 to vector<2x64xi32>
    %75 = vector.broadcast %71 : i32 to vector<2x64xi32>
    %76 = arith.select %73, %74, %75 : vector<2x64xi1>, vector<2x64xi32>
    %77 = arith.cmpi eq, %0, %76 : vector<2x64xi32>
    %78 = arith.extui %77 : vector<2x64xi1> to vector<2x64xi32>
    %79 = arith.sitofp %78 : vector<2x64xi32> to vector<2x64xf32>
    %80 = arith.addf %67, %79 : vector<2x64xf32>
    %81 = arith.index_cast %arg0 : i32 to index
    %c6 = arith.constant 6 : index
    %82 = memref.load %arg1[%81, %c6] : memref<8x16xi32, #tpu.memory_space<smem>>
    %83 = arith.index_cast %arg0 : i32 to index
    %c14 = arith.constant 14 : index
    %84 = memref.load %arg1[%83, %c14] : memref<8x16xi32, #tpu.memory_space<smem>>
    %c0_i32_5 = arith.constant 0 : i32
    %85 = vector.broadcast %c0_i32_5 : i32 to vector<2x64xi32>
    %86 = arith.cmpi eq, %1, %85 : vector<2x64xi32>
    %87 = vector.broadcast %82 : i32 to vector<2x64xi32>
    %88 = vector.broadcast %84 : i32 to vector<2x64xi32>
    %89 = arith.select %86, %87, %88 : vector<2x64xi1>, vector<2x64xi32>
    %90 = arith.cmpi eq, %0, %89 : vector<2x64xi32>
    %91 = arith.extui %90 : vector<2x64xi1> to vector<2x64xi32>
    %92 = arith.sitofp %91 : vector<2x64xi32> to vector<2x64xf32>
    %93 = arith.addf %80, %92 : vector<2x64xf32>
    %94 = arith.index_cast %arg0 : i32 to index
    %c7 = arith.constant 7 : index
    %95 = memref.load %arg1[%94, %c7] : memref<8x16xi32, #tpu.memory_space<smem>>
    %96 = arith.index_cast %arg0 : i32 to index
    %c15 = arith.constant 15 : index
    %97 = memref.load %arg1[%96, %c15] : memref<8x16xi32, #tpu.memory_space<smem>>
    %c0_i32_6 = arith.constant 0 : i32
    %98 = vector.broadcast %c0_i32_6 : i32 to vector<2x64xi32>
    %99 = arith.cmpi eq, %1, %98 : vector<2x64xi32>
    %100 = vector.broadcast %95 : i32 to vector<2x64xi32>
    %101 = vector.broadcast %97 : i32 to vector<2x64xi32>
    %102 = arith.select %99, %100, %101 : vector<2x64xi1>, vector<2x64xi32>
    %103 = arith.cmpi eq, %0, %102 : vector<2x64xi32>
    %104 = arith.extui %103 : vector<2x64xi1> to vector<2x64xi32>
    %105 = arith.sitofp %104 : vector<2x64xi32> to vector<2x64xf32>
    %106 = arith.addf %93, %105 : vector<2x64xf32>
    %cst_7 = arith.constant 1.250000e-01 : f32
    %107 = vector.broadcast %cst_7 : f32 to vector<2x64xf32>
    %108 = arith.mulf %106, %107 : vector<2x64xf32>
    %c0_8 = arith.constant 0 : index
    %c0_9 = arith.constant 0 : index
    %109 = vector.load %arg2[%c0_8, %c0_9] : memref<96x128xf32, #tpu.memory_space<vmem>>, vector<64x128xf32>
    %cst_10 = arith.constant dense<0.000000e+00> : vector<2x128xf32>
    %110 = tpu.matmul %108, %109, %cst_10 {dimension_numbers = #tpu.dot_dimension_numbers<[1], [0], [0], [1], [0, 0, 1, 1], [], []>} : vector<2x64xf32>, vector<64x128xf32>, vector<2x128xf32> -> vector<2x128xf32>
    %c88 = arith.constant 88 : index
    %c0_11 = arith.constant 0 : index
    %111 = vector.load %arg2[%c88, %c0_11] : memref<96x128xf32, #tpu.memory_space<vmem>>, vector<1x128xf32>
    %112 = vector.broadcast %111 : vector<1x128xf32> to vector<2x128xf32>
    %113 = arith.addf %110, %112 : vector<2x128xf32>
    %114 = math.tanh %113 : vector<2x128xf32>
    %115 = vector.extract_strided_slice %114 {offsets = [0, 0], sizes = [2, 24], strides = [1, 1]} : vector<2x128xf32> to vector<2x24xf32>
    %c64 = arith.constant 64 : index
    %c0_12 = arith.constant 0 : index
    %116 = vector.load %arg2[%c64, %c0_12] : memref<96x128xf32, #tpu.memory_space<vmem>>, vector<24x128xf32>
    %cst_13 = arith.constant dense<0.000000e+00> : vector<2x128xf32>
    %117 = tpu.matmul %115, %116, %cst_13 {dimension_numbers = #tpu.dot_dimension_numbers<[1], [0], [0], [1], [0, 0, 1, 1], [], []>} : vector<2x24xf32>, vector<24x128xf32>, vector<2x128xf32> -> vector<2x128xf32>
    %c89 = arith.constant 89 : index
    %c0_14 = arith.constant 0 : index
    %118 = vector.load %arg2[%c89, %c0_14] : memref<96x128xf32, #tpu.memory_space<vmem>>, vector<2x128xf32>
    %119 = tpu.iota {dimensions = array<i32: 0>} : vector<2x128xi32>
    %c0_i32_15 = arith.constant 0 : i32
    %120 = vector.broadcast %c0_i32_15 : i32 to vector<2x128xi32>
    %121 = arith.cmpi eq, %119, %120 : vector<2x128xi32>
    %122 = arith.extui %121 : vector<2x128xi1> to vector<2x128xi32>
    %123 = arith.sitofp %122 : vector<2x128xi32> to vector<2x128xf32>
    %124 = vector.extract_strided_slice %114 {offsets = [1, 0], sizes = [1, 128], strides = [1, 1]} : vector<2x128xf32> to vector<1x128xf32>
    %125 = vector.broadcast %124 : vector<1x128xf32> to vector<2x128xf32>
    %126 = arith.mulf %123, %125 : vector<2x128xf32>
    %127 = arith.addf %118, %126 : vector<2x128xf32>
    %128 = arith.mulf %117, %127 : vector<2x128xf32>
    %129 = vector.shape_cast %128 : vector<2x128xf32> to vector<1x2x128xf32>
    %cst_16 = arith.constant dense<0.000000e+00> : vector<1xf32>
    %130 = vector.multi_reduction <add>, %129, %cst_16 [1, 2] : vector<1x2x128xf32> to vector<1xf32>
    %131 = vector.shape_cast %130 : vector<1xf32> to vector<1x1x1xf32>
    %132 = vector.extract %131[0, 0, 0] : f32 from vector<1x1x1xf32>
    %133 = vector.broadcast %132 : f32 to vector<1x1xf32>
    %c91 = arith.constant 91 : index
    %c0_17 = arith.constant 0 : index
    %134 = vector.load %arg2[%c91, %c0_17] : memref<96x128xf32, #tpu.memory_space<vmem>>, vector<1x128xf32>
    %135 = vector.broadcast %133 : vector<1x1xf32> to vector<1x128xf32>
    %136 = arith.addf %135, %134 : vector<1x128xf32>
    %137 = arith.negf %136 : vector<1x128xf32>
    %138 = math.exp %137 : vector<1x128xf32>
    %cst_18 = arith.constant 1.000000e+00 : f32
    %139 = vector.broadcast %cst_18 : f32 to vector<1x128xf32>
    %140 = arith.addf %139, %138 : vector<1x128xf32>
    %141 = arith.divf %139, %140 : vector<1x128xf32>
    %142 = vector.shape_cast %141 : vector<1x128xf32> to vector<1x1x128xf32>
    %c0_19 = arith.constant 0 : index
    %c0_20 = arith.constant 0 : index
    %c0_21 = arith.constant 0 : index
    %143 = vector.load %arg3[%c0_19, %c0_20, %c0_21] : memref<1x1x128xf32, #tpu.memory_space<vmem>>, vector<1x1x128xf32>
    tpu.vector_store %arg3[%c0_19, %c0_20, %c0_21], %142 {strides = array<i32>} : memref<1x1x128xf32, #tpu.memory_space<vmem>>, vector<1x1x128xf32>,
    return
  }
  func.func @transform_0(%arg0: i32, %arg1: memref<8x16xi32, #tpu.memory_space<smem>>) -> (i32, i32) {
    %c0_i32 = arith.constant 0 : i32
    %c0_i32_0 = arith.constant 0 : i32
    %c0_i32_1 = arith.constant 0 : i32
    return %c0_i32, %c0_i32_0 : i32, i32
  }
  func.func @transform_1(%arg0: i32, %arg1: memref<8x16xi32, #tpu.memory_space<smem>>) -> (i32, i32, i32) {
    %c0_i32 = arith.constant 0 : i32
    %c0_i32_0 = arith.constant 0 : i32
    %c0_i32_1 = arith.constant 0 : i32
    return %arg0, %c0_i32, %c0_i32_0 : i32, i32, i32
  }
}

</mosaic_0001>

<bundles_post_ra>
// kernel: model_forward.1
= control target key start
LH: loop header
LB: loop body
LE: loop exit
PB: predicated region body
PF: predicated region fallthrough
CT: control target
= control target key end

     0   :  { %s801_s0 = inlined_call_operand.hbm [shape: s32[8,16], index: 0, kind: input, shape index: {}]   ;;  %s802_s1 = inlined_call_operand.hbm [shape: f32[96,128], index: 1, kind: input, shape index: {}]   ;;  %s803_s2 = inlined_call_operand.vmem [shape: f32[8,1,128], index: 2, kind: output, shape index: {}]  }
   0x1   :  { %s561_s11 = scalar_lea.hbm %s801_s0, 128 }
   0x2   :  { %p562_p0 = scmp.ne.s32.totalorder %s801_s0, %s561_s11  ;;  %p565_p1 = scmp.lt.u32.totalorder %s561_s11, %s801_s0 }
   0x4   :  { %p567_p2 = pnand %p565_p1, %p562_p0 }
   0x6   :  { %570 = shalt.err (!%p567_p2)  }
   0x7   :  { %s613_s16 = smov [#allocation3]  }
   0x8   :  { %8 = dma.hbm_to_smem %s801_s0, 128, %s613_s16, [#allocation2] }
   0x9   :  { %603 = dma.done.wait [#allocation2], 128 }
   0xa   :  { %604 = vsyncadd [#allocation2], 4294967168 }
   0xb   :  { %10 = sfence }
   0xc   :  { %11 = vsyncpa [#allocation5], 0  ;;  %s647_s19 = smov 0  }
   0xd LB: > { %s653_s20 = sadd.s32 4294967295, %s611_s19   ;;  %p452_p3 = scmp.ge.s32.totalorder %s611_s19, 1  ;;  %s611_s19 = sphi %s647_s19, %s17_s19  }
   0xe   : > { %p69_p4 = scmp.lt.s32.totalorder %s611_s19, 9  ;;  %s614_s0 = smov [#allocation4]  }
   0xf   : > { %s81_s21 = sshll.u32 %s614_s0, 4  ;;  %p804_p6 = scmp.eq.s32.totalorder %s653_s20, 0  ;;  %s82_s21 = int_to_ptr.vmem [resolvable:$true] %s81_s21 }
  0x10   : > { %p657_p5 = pnand %p452_p3, %p69_p4  ;;  %s571_s26 = scalar_lea.hbm %s802_s1, 1536 }
  0x11   : > { %p572_p9 = scmp.ne.s32.totalorder %s802_s1, %s571_s26  ;;  %p578_p13 = scmp.lt.u32.totalorder %s571_s26, %s802_s1 }
  0x12   : > { %s806_s22 = scalar_select %p657_p5, 1, 0 }
  0x13   : > { %p534_p7 = pneg %p657_p5 }
  0x15   : > { %p666_p8 = pnand %p804_p6, %p534_p7 }
  0x17   : > { %p573_p10 = pneg %p666_p8 }
  0x19   : > { %p574_p11 = pnand %p573_p10, %p572_p9 }
  0x1b   : > { %p575_p12 = pneg %p574_p11 }
  0x1d   : > { %p580_p0 = pnand %p578_p13, %p575_p12 }
  0x1f   : > { %583 = shalt.err (!%p580_p0)
}
  0x20   : > { %s584_s3 = scalar_lea.vmem %s82_s21, 1536  ;;  %p592_p4 = scmp.lt.s32.totalorder %s82_s21, %s82_s21 }
  0x21   : > { %p585_p1 = scmp.ne.s32.totalorder %s82_s21, %s584_s3  ;;  %p593_p7 = scmp.lt.s32.totalorder %s584_s3, %s584_s3 }
  0x23   : > { %p587_p2 = pnand %p585_p1, %p573_p10  ;;  %p594_p6 = por %p593_p7, %p592_p4 }
  0x25   : > { %p588_p3 = pneg %p587_p2 }
  0x27   : > { %p595_p5 = pnand %p594_p6, %p588_p3 }
  0x29   : > { %598 = shalt.err (!%p595_p5)
}
  0x2a   : > { %s615_s4 = smov 128   ;;  %s616_s5 = smov 8  }
  0x2b   : > { %537 = dma.hbm_to_vmem [thread:$0]  (!%p666_p8), %s802_s1, 1536, %s82_s21, [#allocation5], %s615_s4, %s615_s4, %s616_s5  }
  0x2c   : > { %p808_p9 = scmp.ne.s32.totalorder %s806_s22, 0 }
  0x2d   : > { %p809_p11 = scmp.eq.s32.totalorder (!%p808_p9), %s653_s20, 0 }
  0x2e   : > { %97 = sbr.rel (%p808_p9) target bundleno = 758 (0x2f6), region = 24 }
  0x35   : > { %606 = dma.done.wait (%p809_p11), [#allocation5], 1536   ;;  %p810_p10 = pmov %p809_p11 }
  0x36   : > { %v113_v0 = vlaneseq  ;;  %s693_s8 = sshll.u32 %s653_s20, 7  ;;  %v617_v1 = vmov 0.0|0.0   ;;  %vm618_vm0 = vmmov 0   ;;  %v619_v2 = vmov 0.0   ;;  %v207_v5 = vld [vmem:[#allocation4] sm:$0xff]  ;;  %v208_v6 = vld [vmem:[#allocation4 + $0x8] sm:$0xff] }
  0x37   : > { %608 = vsyncadd (%p810_p10), [#allocation5], 4294965760  ;;  %513 = vmatprep.subr.bf16.mxu0 %v617_v1  ;;  %501 = vmatprep.mubr.msk.f32.mxu0 %vm618_vm0, %v619_v2  ;;  %s118_s9 = sld [smem:[#allocation3 + %s693_s8]]  ;;  %s119_s10 = sadd.s32 8, %s693_s8  ;;  %v209_v7 = vld [vmem:[#allocation4 + $0x10] sm:$0xff]  ;;  %v514_v9 = vpack.c.bf16 %v208_v6, %v207_v5  ;;  %v210_v10 = vld [vmem:[#allocation4 + $0x18] sm:$0xff] }
  0x38   : > { %v699_v3 = vshrl.u32 %v113_v0, 7  ;;  %s120_s11 = sld [smem:[#allocation3 + %s119_s10]]  ;;  %s129_s12 = sadd.s32 1, %s693_s8  ;;  %525 = vmatprep.subr.bf16.mxu1 %v617_v1  ;;  %510 = vmatprep.mubr.msk.f32.mxu1 %vm618_vm0, %v619_v2  ;;  %v713_v4 = vand.u32 127, %v113_v0  ;;  %v517_v14 = vpack.c.bf16 %v210_v10, %v209_v7  ;;  %v211_v16 = vld [vmem:[#allocation4 + $0x20] sm:$0xff]  ;;  %v212_v17 = vld [vmem:[#allocation4 + $0x28] sm:$0xff] }
  0x39   : > { %s704_s13 = sld [smem:[#allocation3 + %s129_s12]]  ;;  %s131_s14 = sadd.s32 9, %s693_s8  ;;  %515 = vmatpush3.bf16.msra.mxu0 %v514_v9  ;;  %v520_v25 = vpack.c.bf16 %v212_v17, %v211_v16  ;;  %v213_v28 = vld [vmem:[#allocation4 + $0x30] sm:$0xff]  ;;  %v214_v29 = vld [vmem:[#allocation4 + $0x38] sm:$0xff]  ;;  %vm220_vm10 = vcmask 523264   ;;  %v295_v57 = vld [vmem:[#allocation4 + $0x40] sm:$0xff] }
  0x3a   : > { %s707_s15 = sld [smem:[#allocation3 + %s131_s14]]  ;;  %s140_s16 = sadd.s32 2, %s693_s8  ;;  %vm121_vm1 = vcmp.eq.s32.totalorder %v699_v3, 0  ;;  %516 = vmatprep.subr.bf16.mxu0 %v617_v1  ;;  %v523_v38 = vpack.c.bf16 %v214_v29, %v213_v28  ;;  %v296_v58 = vld [vmem:[#allocation4 + $0x48] sm:$0xff]  ;;  %v297_v60 = vld [vmem:[#allocation4 + $0x50] sm:$0xff]  ;;  %vm298_vm11 = vcmask 195584  }
  0x3b   : > { %s710_s17 = sld [smem:[#allocation3 + %s140_s16]]  ;;  %s142_s18 = sadd.s32 10, %s693_s8  ;;  %v526_v59 = vpack.c.bf16 %v296_v58, %v295_v57  ;;  %v465_v61 = vld [vmem:[#allocation4 + $0x58] ss:$0 sm:$0xff]  ;;  %v468_v6 = vsel %vm121_vm1, 1.0, %v619_v2  ;;  %vm382_vm12 = vcmask 1041408  }
  0x3c   : > { %s716_s0 = sld [smem:[#allocation3 + %s142_s18]]  ;;  %s151_s21 = sadd.s32 3, %s693_s8 }
  0x3d   : > { %v122_v8 = vstv %s118_s9  ;;  %s719_s22 = sld [smem:[#allocation3 + %s151_s21]]  ;;  %s153_s23 = sadd.s32 11, %s693_s8  ;;  %518 = vmatpush3.bf16.msra.mxu0 %v517_v14  ;;  %527 = vmatpush3.bf16.msra.mxu1 %v526_v59 }
  0x3e   : > { %v123_v11 = vstv %s120_s11  ;;  %s722_s24 = sld [smem:[#allocation3 + %s153_s23]]  ;;  %s162_s25 = sadd.s32 4, %s693_s8  ;;  %519 = vmatprep.subr.bf16.mxu0 %v617_v1  ;;  %508 = vmatprep.subr.mxu1 %v619_v2 }
  0x3f   : > { %v124_v12 = vsel %vm121_vm1, %v122_v8, %v123_v11  ;;  %v133_v13 = vstv %s704_s13  ;;  %s728_s26 = sld [smem:[#allocation3 + %s162_s25]]  ;;  %s164_s27 = sadd.s32 12, %s693_s8  ;;  %v372_v8 = vld [vmem:[#allocation4 + $0x59] sm:$0x3] }
  0x40   : > { %vm125_vm2 = vcmp.eq.s32.totalorder %v713_v4, %v124_v12  ;;  %v134_v15 = vstv %s707_s15  ;;  %s733_s28 = sld [smem:[#allocation3 + %s164_s27]]  ;;  %s173_s29 = sadd.s32 5, %s693_s8 }
  0x41   : > { %v457_v18 = vsel %vm125_vm2, 1.0, %v619_v2  ;;  %v135_v19 = vsel %vm121_vm1, %v133_v13, %v134_v15  ;;  %v144_v20 = vstv %s710_s17  ;;  %s741_s30 = sld [smem:[#allocation3 + %s173_s29]]  ;;  %s175_s3 = sadd.s32 13, %s693_s8  ;;  %521 = vmatpush3.bf16.msra.mxu0 %v520_v25  ;;  %509 = vmatpush3.msra.mxu1 %v297_v60 }
  0x42   : > { %vm136_vm3 = vcmp.eq.s32.totalorder %v713_v4, %v135_v19  ;;  %v145_v21 = vstv %s716_s0  ;;  %s746_s4 = sld [smem:[#allocation3 + %s175_s3]]  ;;  %s184_s5 = sadd.s32 6, %s693_s8  ;;  %522 = vmatprep.subr.bf16.mxu0 %v617_v1 }
  0x43   : > { %v458_v22 = vsel %vm136_vm3, 1.0, %v619_v2  ;;  %v146_v23 = vsel %vm121_vm1, %v144_v20, %v145_v21  ;;  %v155_v24 = vstv %s719_s22  ;;  %s753_s6 = sld [smem:[#allocation3 + %s184_s5]]  ;;  %s186_s7 = sadd.s32 14, %s693_s8 }
  0x44   : > { %v139_v26 = vadd.f32 %v458_v22, %v457_v18  ;;  %vm147_vm4 = vcmp.eq.s32.totalorder %v713_v4, %v146_v23  ;;  %v156_v27 = vstv %s722_s24  ;;  %s187_s9 = sld [smem:[#allocation3 + %s186_s7]]  ;;  %s195_s10 = sadd.s32 7, %s693_s8 }
  0x45   : > { %v459_v30 = vsel %vm147_vm4, 1.0, %v619_v2  ;;  %v157_v31 = vsel %vm121_vm1, %v155_v24, %v156_v27  ;;  %v166_v32 = vstv %s728_s26  ;;  %s196_s11 = sld [smem:[#allocation3 + %s195_s10]]  ;;  %s197_s12 = sadd.s32 15, %s693_s8  ;;  %524 = vmatpush3.bf16.msra.mxu0 %v523_v38 }
  0x46   : > { %v150_v33 = vadd.f32 %v459_v30, %v139_v26  ;;  %vm158_vm5 = vcmp.eq.s32.totalorder %v713_v4, %v157_v31  ;;  %v167_v34 = vstv %s733_s28  ;;  %s198_s13 = sld [smem:[#allocation3 + %s197_s12]]  ;;  %p110_p5 = scmp.lt.s32.totalorder %s653_s20, 7 }
  0x47   : > { %v460_v35 = vsel %vm158_vm5, 1.0, %v619_v2  ;;  %v168_v36 = vsel %vm121_vm1, %v166_v32, %v167_v34  ;;  %v177_v37 = vstv %s741_s30 }
  0x48   : > { %v161_v39 = vadd.f32 %v460_v35, %v150_v33  ;;  %vm169_vm6 = vcmp.eq.s32.totalorder %v713_v4, %v168_v36  ;;  %v178_v40 = vstv %s746_s4  ;;  %s812_s20 = smov (!%p110_p5, %s653_s20), 7 }
  0x49   : > { %v461_v41 = vsel %vm169_vm6, 1.0, %v619_v2  ;;  %v179_v42 = vsel %vm121_vm1, %v177_v37, %v178_v40  ;;  %v188_v43 = vstv %s753_s6  ;;  %s112_s16 = scalar_lea.vmem %s803_s2, %s812_s20 }
  0x4a   : > { %v172_v44 = vadd.f32 %v461_v41, %v161_v39  ;;  %vm180_vm7 = vcmp.eq.s32.totalorder %v713_v4, %v179_v42  ;;  %v189_v45 = vstv %s187_s9 }
  0x4b   : > { %v462_v46 = vsel %vm180_vm7, 1.0, %v619_v2  ;;  %v190_v47 = vsel %vm121_vm1, %v188_v43, %v189_v45  ;;  %v199_v48 = vstv %s196_s11 }
  0x4c   : > { %v183_v49 = vadd.f32 %v462_v46, %v172_v44  ;;  %vm191_vm8 = vcmp.eq.s32.totalorder %v713_v4, %v190_v47  ;;  %v200_v50 = vstv %s198_s13 }
  0x4d   : > { %v463_v51 = vsel %vm191_vm8, 1.0, %v619_v2  ;;  %v201_v52 = vsel %vm121_vm1, %v199_v48, %v200_v50 }
  0x4e   : > { %v194_v53 = vadd.f32 %v463_v51, %v183_v49  ;;  %vm202_vm9 = vcmp.eq.s32.totalorder %v713_v4, %v201_v52  ;;  %v377_v4 = vsub.s32 1, %v699_v3 }
  0x4f   : > { %v464_v54 = vsel %vm202_vm9, 1.0, %v619_v2  ;;  %v393_v2 = vld [vmem:[#allocation4 + $0x5b] sm:$0x1] }
  0x50   : > { %v205_v55 = vadd.f32 %v464_v54, %v194_v53 }
  0x52   : > { %v206_v56 = vmul.f32 0.125, %v205_v55 }
  0x54   : > { %502 = vmatmul.mubr.msk.f32.vlgmr.msra.gmra.mrb[0].mxu0 %vm220_vm10, %v206_v56 }
 0x127   : > { %v290_v62 = vpop.f32.mrb[0].mxu0 }
 0x128   : > { %v291_v63 = vadd.f32 %v465_v61, %v290_v62  ;;  %v503_v0 = vpop.f32.mrb[1].mxu0 }
 0x12a   : > { %555 = vtanh.f32 %v291_v63 }
 0x134   : > { %v556_v1 = vpop.eup %555 }
 0x135   : > { %511 = vmatmul.mubr.msk.f32.vlgmr.msra.gmra.mrb[0].mxu1 %vm298_vm11, %v556_v1  ;;  %v378_v5 = vrot.slane %v556_v1, %v377_v4 }
 0x137   : > { %v379_v7 = vmul.f32 %v468_v6, %v378_v5 }
 0x139   : > { %v380_v9 = vadd.f32 %v379_v7, %v372_v8 }
 0x208   : > { %v368_v10 = vpop.f32.mrb[0].mxu1 }
 0x209   : > { %v381_v11 = vmul.f32 %v380_v9, %v368_v10  ;;  %v512_v12 = vpop.f32.mrb[1].mxu1 }
 0x20b   : > { %v383_v13 = vsel %vm382_vm12, %v381_v11, 0.0 }
 0x20c   : > { %384 = vadd.xlane.f32.xlu0 %v383_v13 }
 0x299   : > { %v385_v14 = vpop.xlane.xlu0 %384 }
 0x29a   : > { %v386_v15 = vrot.slane %v385_v14, 4 }
 0x29c   : > { %v387_v16 = vadd.f32 %v386_v15, %v385_v14 }
 0x29e   : > { %v388_v17 = vrot.slane %v387_v16, 2 }
 0x2a0   : > { %v389_v18 = vadd.f32 %v388_v17, %v387_v16 }
 0x2a2   : > { %v390_v19 = vrot.slane %v389_v18, 1 }
 0x2a4   : > { %v391_v20 = vadd.f32 %v390_v19, %v389_v18 }
 0x2a6   : > { %528 = vpush %v391_v20 }
 0x2d7   : > { %s529_s8 = spop %528 }
 0x2d8   : > { %v394_v3 = vstv %s529_s8 }
 0x2d9   : > { %v395_v21 = vadd.f32 %v394_v3, %v393_v2 }
 0x2db   : > { %v469_v22 = vmul.f32 -1.442695, %v395_v21 }
 0x2dd   : > { %557 = vpow2.f32 %v469_v22 }
 0x2e7   : > { %v558_v23 = vpop.eup %557 }
 0x2e8   : > { %v399_v24 = vadd.f32 1.0, %v558_v23 }
 0x2ea   : > { %559 = vrcp.f32 %v399_v24 }
 0x2f4   : > { %v560_v25 = vpop.eup %559 }
 0x2f5   : > { %402 = vst [vmem:[%s112_s16] sm:$0x1] %v560_v25 }
 0x2f6 PF: > { %s17_s19 = sadd.s32 1, %s611_s19  }
 0x2f7   : > { %p14_p6 = scmp.ge.s32.totalorder %s17_s19, 10  }
 0x2f9   :  { %16 = sbr.rel (!%p14_p6) target bundleno = 13 (0xd), region = 56 }
 0x300   :  { %420 = vsyncpa [#allocation5], 1 }
 0x301   :  { %422 = vsyncpa [#allocation5 + $0x1], 1 }

</bundles_post_ra>
